<compile_context>
chip_gen: v5e
topology: v5e:2x2
jax: 0.10.0
libtpu: 0.0.40
codegen_flags: <defaults>
</compile_context>

<pallas_src>
import jax
import jax.numpy as jnp
from jax.experimental import pallas as pl
from jax.experimental.pallas import tpu as pltpu

# ---- "TNNConfig" (small, self-contained, deterministic) --------------------
VOCAB_SIZE = 50       # TNNConfig.vocab_size
EMBED_DIM = 32        # TNNConfig.embedding
SEQ_LEN = 8           # TNNConfig.seq_len
KERNEL_NUM = 16       # TNNConfig.num_fifters
FILTER_SIZE = 3       # TNNConfig.filter_sizes[0]
NUM_CLASS = 4         # TNNConfig.num_class
BATCH = 2

T_OUT = SEQ_LEN - FILTER_SIZE + 1  # conv output length / max-pool window
LANE = 128


def _round_up(x, m):
    return (x + m - 1) // m * m


VOCAB_PAD = _round_up(VOCAB_SIZE, LANE)   # 128: lane-dense one-hot gather
C_PAD = _round_up(KERNEL_NUM, LANE)       # 128: lane-dense conv channels
OUT_PAD = _round_up(NUM_CLASS, LANE)      # 128: lane-dense logits store


def _make_textcnn_kernel(seq_len, ksize):
    t_out = seq_len - ksize + 1

    def kernel(ids_ref, emb_ref, wconv_ref, bconv_ref, wfc_ref, bfc_ref, out_ref):
        tbs = ids_ref.shape[0]               # TB * S (S = 8 -> multiple of 8)
        tb = tbs // seq_len
        vocab_pad, d = emb_ref.shape
        c_pad = wconv_ref.shape[1]

        # 1) Fused embedding gather: one-hot (TB*S, VOCAB_PAD) @ (VOCAB_PAD, D).
        #    The whole (padded) table is VMEM-resident, so this is one MXU pass
        #    and the embedded activation never touches HBM.
        # TODO(synk): for production-sized vocabularies replace the one-hot
        # matmul with a scalar-prefetch + DMA row gather from an HBM table.
        ids = ids_ref[...]                                            # (TB*S, 1) i32
        hot = (jax.lax.broadcasted_iota(jnp.int32, (tbs, vocab_pad), 1)
               == ids).astype(jnp.bfloat16)                           # (TB*S, VOCAB_PAD)
        emb = jnp.dot(hot, emb_ref[...],
                      preferred_element_type=jnp.float32)             # (TB*S, D) f32
        emb = emb.astype(jnp.bfloat16)

        # 2) im2col on the flat batch*time axis: K shifted slices concatenated
        #    on the lane axis -> ONE (TB*S, K*D) @ (K*D, C_PAD) bf16 MXU matmul.
        #    Rows whose window crosses a sequence boundary are junk and are
        #    masked to 0 after ReLU (safe: ReLU output is >= 0) before pooling.
        emb_ext = jnp.concatenate(
            [emb, jnp.zeros((ksize - 1, d), jnp.bfloat16)], axis=0)   # (TB*S+K-1, D)
        windows = jnp.concatenate(
            [emb_ext[i:i + tbs, :] for i in range(ksize)], axis=1)    # (TB*S, K*D)
        conv = jnp.dot(windows, wconv_ref[...],
                       preferred_element_type=jnp.float32)            # (TB*S, C_PAD)
        relu = jnp.maximum(conv + bconv_ref[...], 0.0)

        # 3) Mask invalid time positions, then max-pool over time.
        t_in_seq = jax.lax.broadcasted_iota(jnp.int32, (tbs, 1), 0) % seq_len
        relu = jnp.where(t_in_seq < t_out, relu, 0.0)
        pooled = jnp.max(relu.reshape(tb, seq_len, c_pad), axis=1)    # (TB, C_PAD)

        # TODO(synk): nn.Dropout is identity at inference; train-mode masking
        # is not implemented.

        # 4) FC on lane-padded channels/classes (pad rows/cols are exactly 0,
        #    so logits[:, NUM_CLASS:] == 0 and are sliced off in the wrapper).
        logits = jnp.dot(pooled.astype(jnp.bfloat16), wfc_ref[...],
                         preferred_element_type=jnp.float32) + bfc_ref[...]
        out_ref[...] = logits.astype(out_ref.dtype)

    return kernel


def prepare_params(emb_table, wconv_t, bconv, wfc_t, bfc):
    """Pack torch-layout params into kernel layout ONCE (not per forward call)."""
    k, d, c, nc = FILTER_SIZE, EMBED_DIM, KERNEL_NUM, NUM_CLASS

    emb_pad = jnp.zeros((VOCAB_PAD, d), jnp.bfloat16)
    emb_pad = emb_pad.at[:VOCAB_SIZE].set(emb_table.astype(jnp.bfloat16))

    # torch Conv2d weight (C, 1, K, D) -> (K*D, C_PAD): im2col column i*D+d
    # must line up with w[c, 0, i, d].
    wconv = jnp.transpose(wconv_t[:, 0], (1, 2, 0)).reshape(k * d, c)
    wconv_pad = jnp.zeros((k * d, C_PAD), jnp.bfloat16)
    wconv_pad = wconv_pad.at[:, :c].set(wconv.astype(jnp.bfloat16))

    bconv_pad = jnp.zeros((1, C_PAD), jnp.float32).at[0, :c].set(bconv)

    wfc_pad = jnp.zeros((C_PAD, OUT_PAD), jnp.bfloat16)
    wfc_pad = wfc_pad.at[:c, :nc].set(wfc_t.T.astype(jnp.bfloat16))

    bfc_pad = jnp.zeros((1, OUT_PAD), jnp.float32).at[0, :nc].set(bfc)

    return dict(emb=emb_pad, wconv=wconv_pad, bconv=bconv_pad,
                wfc=wfc_pad, bfc=bfc_pad)


@jax.jit
def textcnn_forward(x_ids, params):
    """x_ids: (B, S) int32 token ids. Returns (B, NUM_CLASS) f32 logits."""
    b, s = x_ids.shape
    assert s == SEQ_LEN

    # Batch tile: keep blocks (TB*S, 1)/(TB, 128) legal and small enough to fit
    # double-buffered in every generation's VMEM (v7x has only 64 MiB physical).
    if b <= 128 or b % 128 != 0:
        tb = b
    else:
        tb = 128
    grid = (b // tb,)

    ids2 = x_ids.reshape(b * s, 1).astype(jnp.int32)
    kernel = _make_textcnn_kernel(SEQ_LEN, FILTER_SIZE)

    flops = (2 * b * s * VOCAB_PAD * EMBED_DIM                  # one-hot gather
             + 2 * b * s * FILTER_SIZE * EMBED_DIM * C_PAD      # im2col conv
             + 2 * b * C_PAD * OUT_PAD)                         # fc
    bytes_accessed = int(
        ids2.size * 4
        + sum(int(p.size) * p.dtype.itemsize for p in params.values())
        + b * OUT_PAD * 4)

    out = pl.pallas_call(
        kernel,
        out_shape=jax.ShapeDtypeStruct((b, OUT_PAD), jnp.float32),
        grid_spec=pltpu.PrefetchScalarGridSpec(
            num_scalar_prefetch=0,
            grid=grid,
            in_specs=[
                pl.BlockSpec((tb * s, 1), lambda i: (i, 0)),             # token ids
                pl.BlockSpec(params["emb"].shape, lambda i: (0, 0)),     # emb table
                pl.BlockSpec(params["wconv"].shape, lambda i: (0, 0)),   # conv w
                pl.BlockSpec(params["bconv"].shape, lambda i: (0, 0)),   # conv b
                pl.BlockSpec(params["wfc"].shape, lambda i: (0, 0)),     # fc w
                pl.BlockSpec(params["bfc"].shape, lambda i: (0, 0)),     # fc b
            ],
            out_specs=pl.BlockSpec((tb, OUT_PAD), lambda i: (i, 0)),
        ),
        compiler_params=pltpu.CompilerParams(
            dimension_semantics=("parallel",),       # shards across v7x's 2 TCs
            vmem_limit_bytes=32 * 1024 * 1024,       # valid on v5e/v6e/v7x
        ),
        cost_estimate=pl.CostEstimate(
            flops=flops, transcendentals=0, bytes_accessed=bytes_accessed),
    )(ids2, params["emb"], params["wconv"], params["bconv"],
      params["wfc"], params["bfc"])

    return out[:, :NUM_CLASS]


def reference_forward(x_ids, emb_table, wconv_t, bconv, wfc_t, bfc):
    """Pure-JAX f32 reference mirroring the PyTorch forward."""
    emb = emb_table[x_ids].astype(jnp.float32)                         # (B,S,D)
    windows = jnp.stack([emb[:, i:i + T_OUT, :] for i in range(FILTER_SIZE)],
                        axis=2)                                        # (B,T,K,D)
    conv = jnp.einsum("btkd,ckd->btc", windows, wconv_t[:, 0]) + bconv
    relu = jnp.maximum(conv, 0.0)
    pooled = relu.max(axis=1)                                          # (B,C)
    return pooled @ wfc_t.T + bfc


if __name__ == "__main__":
    key = jax.random.PRNGKey(0)
    k_emb, k_wc, k_bc, k_wf, k_bf, k_x = jax.random.split(key, 6)

    # Deterministic "pretrained" embedding matrix (row 0 zeroed: padding_idx=0).
    emb_table = jax.random.normal(k_emb, (VOCAB_SIZE, EMBED_DIM), jnp.float32) * 0.1
    emb_table = emb_table.at[0].set(0.0)

    # Conv2d(1, KERNEL_NUM, (FILTER_SIZE, EMBED_DIM)) params, torch layout.
    wconv_t = jax.random.normal(
        k_wc, (KERNEL_NUM, 1, FILTER_SIZE, EMBED_DIM), jnp.float32) * 0.1
    bconv = jax.random.normal(k_bc, (KERNEL_NUM,), jnp.float32) * 0.1

    # Linear(KERNEL_NUM, NUM_CLASS) params, torch layout (out, in).
    wfc_t = jax.random.normal(k_wf, (NUM_CLASS, KERNEL_NUM), jnp.float32) * 0.1
    bfc = jax.random.normal(k_bf, (NUM_CLASS,), jnp.float32) * 0.1

    # Input token ids.
    x_ids = jax.random.randint(k_x, (BATCH, SEQ_LEN), 0, VOCAB_SIZE, jnp.int32)

    # One-time parameter packing (kernel layout, lane-padded, bf16).
    params = prepare_params(emb_table, wconv_t, bconv, wfc_t, bfc)

    out = textcnn_forward(x_ids, params)
    out = jax.block_until_ready(out)

    ref = reference_forward(x_ids, emb_table, wconv_t, bconv, wfc_t, bfc)
    assert out.shape == (BATCH, NUM_CLASS)
    # bf16 MXU operands (f32 accumulation) -> slightly relaxed tolerance vs f32.
    assert jnp.allclose(out, ref, atol=1e-2, rtol=1e-2), (out, ref)

    print("KERNEL_OK")
</pallas_src>

<mosaic_0001>
module attributes {stable_mosaic.version = 11 : i64} {
  func.func @kernel(%arg0: i32, %arg1: memref<16x1xi32, #tpu.memory_space<vmem>>, %arg2: memref<128x32xbf16, #tpu.memory_space<vmem>>, %arg3: memref<96x128xbf16, #tpu.memory_space<vmem>>, %arg4: memref<1x128xf32, #tpu.memory_space<vmem>>, %arg5: memref<128x128xbf16, #tpu.memory_space<vmem>>, %arg6: memref<1x128xf32, #tpu.memory_space<vmem>>, %arg7: memref<2x128xf32, #tpu.memory_space<vmem>>) attributes {dimension_semantics = [#tpu.dimension_semantics<parallel>], iteration_bounds = array<i64: 1>, scalar_prefetch = 0 : i64, scratch_operands = 0 : i64, tpu.core_type = #tpu.core_type<tc>, window_params = [{transform_indices = @transform_0, window_bounds = array<i64: 16, 1>}, {pipeline_mode = #tpu.pipeline_mode<synchronous>, transform_indices = @transform_1, window_bounds = array<i64: 128, 32>}, {pipeline_mode = #tpu.pipeline_mode<synchronous>, transform_indices = @transform_2, window_bounds = array<i64: 96, 128>}, {pipeline_mode = #tpu.pipeline_mode<synchronous>, transform_indices = @transform_3, window_bounds = array<i64: 1, 128>}, {pipeline_mode = #tpu.pipeline_mode<synchronous>, transform_indices = @transform_4, window_bounds = array<i64: 128, 128>}, {pipeline_mode = #tpu.pipeline_mode<synchronous>, transform_indices = @transform_5, window_bounds = array<i64: 1, 128>}, {transform_indices = @transform_6, window_bounds = array<i64: 2, 128>}]} {
    %c0 = arith.constant 0 : index
    %c0_0 = arith.constant 0 : index
    %0 = vector.load %arg1[%c0, %c0_0] : memref<16x1xi32, #tpu.memory_space<vmem>>, vector<16x1xi32>
    %1 = tpu.iota {dimensions = array<i32: 1>} : vector<16x128xi32>
    %2 = vector.broadcast %0 : vector<16x1xi32> to vector<16x128xi32>
    %3 = arith.cmpi eq, %1, %2 : vector<16x128xi32>
    %4 = arith.extui %3 : vector<16x128xi1> to vector<16x128xi32>
    %5 = arith.sitofp %4 : vector<16x128xi32> to vector<16x128xf32>
    %6 = arith.truncf %5 : vector<16x128xf32> to vector<16x128xbf16>
    %c0_1 = arith.constant 0 : index
    %c0_2 = arith.constant 0 : index
    %7 = vector.load %arg2[%c0_1, %c0_2] : memref<128x32xbf16, #tpu.memory_space<vmem>>, vector<128x32xbf16>
    %cst = arith.constant dense<0.000000e+00> : vector<16x32xf32>
    %8 = tpu.matmul %6, %7, %cst {dimension_numbers = #tpu.dot_dimension_numbers<[1], [0], [0], [1], [0, 0, 1, 1], [], []>} : vector<16x128xbf16>, vector<128x32xbf16>, vector<16x32xf32> -> vector<16x32xf32>
    %9 = arith.truncf %8 : vector<16x32xf32> to vector<16x32xbf16>
    %cst_3 = arith.constant 0.000000e+00 : bf16
    %10 = vector.broadcast %cst_3 : bf16 to vector<2x32xbf16>
    %11 = tpu.concatenate %9, %10 in 0 : vector<16x32xbf16>, vector<2x32xbf16> -> vector<18x32xbf16>
    %12 = vector.extract_strided_slice %11 {offsets = [0, 0], sizes = [16, 32], strides = [1, 1]} : vector<18x32xbf16> to vector<16x32xbf16>
    %13 = vector.extract_strided_slice %11 {offsets = [1, 0], sizes = [16, 32], strides = [1, 1]} : vector<18x32xbf16> to vector<16x32xbf16>
    %14 = vector.extract_strided_slice %11 {offsets = [2, 0], sizes = [16, 32], strides = [1, 1]} : vector<18x32xbf16> to vector<16x32xbf16>
    %15 = tpu.concatenate %12, %13, %14 in 1 : vector<16x32xbf16>, vector<16x32xbf16>, vector<16x32xbf16> -> vector<16x96xbf16>
    %c0_4 = arith.constant 0 : index
    %c0_5 = arith.constant 0 : index
    %16 = vector.load %arg3[%c0_4, %c0_5] : memref<96x128xbf16, #tpu.memory_space<vmem>>, vector<96x128xbf16>
    %cst_6 = arith.constant dense<0.000000e+00> : vector<16x128xf32>
    %17 = tpu.matmul %15, %16, %cst_6 {dimension_numbers = #tpu.dot_dimension_numbers<[1], [0], [0], [1], [0, 0, 1, 1], [], []>} : vector<16x96xbf16>, vector<96x128xbf16>, vector<16x128xf32> -> vector<16x128xf32>
    %c0_7 = arith.constant 0 : index
    %c0_8 = arith.constant 0 : index
    %18 = vector.load %arg4[%c0_7, %c0_8] : memref<1x128xf32, #tpu.memory_space<vmem>>, vector<1x128xf32>
    %19 = vector.broadcast %18 : vector<1x128xf32> to vector<16x128xf32>
    %20 = arith.addf %17, %19 : vector<16x128xf32>
    %cst_9 = arith.constant 0.000000e+00 : f32
    %21 = vector.broadcast %cst_9 : f32 to vector<16x128xf32>
    %22 = arith.maximumf %20, %21 : vector<16x128xf32>
    %23 = tpu.iota {dimensions = array<i32: 0>} : vector<16x1xi32>
    %c8_i32 = arith.constant 8 : i32
    %c0_i32 = arith.constant 0 : i32
    %24 = arith.cmpi eq, %c8_i32, %c0_i32 : i32
    %c1_i32 = arith.constant 1 : i32
    %25 = arith.select %24, %c1_i32, %c8_i32 : i32
    %26 = vector.broadcast %25 : i32 to vector<16x1xi32>
    %27 = arith.remsi %23, %26 : vector<16x1xi32>
    %c0_i32_10 = arith.constant 0 : i32
    %28 = vector.broadcast %c0_i32_10 : i32 to vector<16x1xi32>
    %29 = arith.cmpi ne, %27, %28 : vector<16x1xi32>
    %c0_i32_11 = arith.constant 0 : i32
    %30 = vector.broadcast %c0_i32_11 : i32 to vector<16x1xi32>
    %31 = arith.cmpi slt, %27, %30 : vector<16x1xi32>
    %c0_i32_12 = arith.constant 0 : i32
    %32 = arith.cmpi slt, %25, %c0_i32_12 : i32
    %33 = vector.broadcast %32 : i1 to vector<16x1xi1>
    %34 = vector.broadcast %33 : vector<16x1xi1> to vector<16x1xi1>
    %35 = arith.xori %31, %34 : vector<16x1xi1>
    %36 = arith.andi %35, %29 : vector<16x1xi1>
    %37 = vector.broadcast %25 : i32 to vector<16x1xi32>
    %38 = arith.addi %27, %37 : vector<16x1xi32>
    %39 = arith.select %36, %38, %27 : vector<16x1xi1>, vector<16x1xi32>
    %c6_i32 = arith.constant 6 : i32
    %40 = vector.broadcast %c6_i32 : i32 to vector<16x1xi32>
    %41 = arith.cmpi slt, %39, %40 : vector<16x1xi32>
    %cst_13 = arith.constant 0.000000e+00 : f32
    %42 = vector.shape_cast %41 : vector<16x1xi1> to vector<16x1xi1>
    %43 = vector.broadcast %42 : vector<16x1xi1> to vector<16x128xi1>
    %44 = vector.broadcast %cst_13 : f32 to vector<16x128xf32>
    %45 = arith.select %43, %22, %44 : vector<16x128xi1>, vector<16x128xf32>
    %46 = vector.shape_cast %45 : vector<16x128xf32> to vector<2x8x128xf32>
    %cst_14 = arith.constant dense<0xFF800000> : vector<2x128xf32>
    %47 = vector.multi_reduction <maximumf>, %46, %cst_14 [1] : vector<2x8x128xf32> to vector<2x128xf32>
    %48 = arith.truncf %47 : vector<2x128xf32> to vector<2x128xbf16>
    %c0_15 = arith.constant 0 : index
    %c0_16 = arith.constant 0 : index
    %49 = vector.load %arg5[%c0_15, %c0_16] : memref<128x128xbf16, #tpu.memory_space<vmem>>, vector<128x128xbf16>
    %cst_17 = arith.constant dense<0.000000e+00> : vector<2x128xf32>
    %50 = tpu.matmul %48, %49, %cst_17 {dimension_numbers = #tpu.dot_dimension_numbers<[1], [0], [0], [1], [0, 0, 1, 1], [], []>} : vector<2x128xbf16>, vector<128x128xbf16>, vector<2x128xf32> -> vector<2x128xf32>
    %c0_18 = arith.constant 0 : index
    %c0_19 = arith.constant 0 : index
    %51 = vector.load %arg6[%c0_18, %c0_19] : memref<1x128xf32, #tpu.memory_space<vmem>>, vector<1x128xf32>
    %52 = vector.broadcast %51 : vector<1x128xf32> to vector<2x128xf32>
    %53 = arith.addf %50, %52 : vector<2x128xf32>
    %c0_20 = arith.constant 0 : index
    %c0_21 = arith.constant 0 : index
    %54 = vector.load %arg7[%c0_20, %c0_21] : memref<2x128xf32, #tpu.memory_space<vmem>>, vector<2x128xf32>
    tpu.vector_store %arg7[%c0_20, %c0_21], %53 {strides = array<i32>} : memref<2x128xf32, #tpu.memory_space<vmem>>, vector<2x128xf32>,
    return
  }
  func.func @transform_0(%arg0: i32) -> (i32, i32) {
    %c0_i32 = arith.constant 0 : i32
    %c0_i32_0 = arith.constant 0 : i32
    return %arg0, %c0_i32 : i32, i32
  }
  func.func @transform_1(%arg0: i32) -> (i32, i32) {
    %c0_i32 = arith.constant 0 : i32
    %c0_i32_0 = arith.constant 0 : i32
    %c0_i32_1 = arith.constant 0 : i32
    return %c0_i32, %c0_i32_0 : i32, i32
  }
  func.func @transform_2(%arg0: i32) -> (i32, i32) {
    %c0_i32 = arith.constant 0 : i32
    %c0_i32_0 = arith.constant 0 : i32
    %c0_i32_1 = arith.constant 0 : i32
    return %c0_i32, %c0_i32_0 : i32, i32
  }
  func.func @transform_3(%arg0: i32) -> (i32, i32) {
    %c0_i32 = arith.constant 0 : i32
    %c0_i32_0 = arith.constant 0 : i32
    %c0_i32_1 = arith.constant 0 : i32
    return %c0_i32, %c0_i32_0 : i32, i32
  }
  func.func @transform_4(%arg0: i32) -> (i32, i32) {
    %c0_i32 = arith.constant 0 : i32
    %c0_i32_0 = arith.constant 0 : i32
    %c0_i32_1 = arith.constant 0 : i32
    return %c0_i32, %c0_i32_0 : i32, i32
  }
  func.func @transform_5(%arg0: i32) -> (i32, i32) {
    %c0_i32 = arith.constant 0 : i32
    %c0_i32_0 = arith.constant 0 : i32
    %c0_i32_1 = arith.constant 0 : i32
    return %c0_i32, %c0_i32_0 : i32, i32
  }
  func.func @transform_6(%arg0: i32) -> (i32, i32) {
    %c0_i32 = arith.constant 0 : i32
    %c0_i32_0 = arith.constant 0 : i32
    return %arg0, %c0_i32 : i32, i32
  }
}

</mosaic_0001>

<bundles_post_ra>
// kernel: textcnn_forward.1
= control target key start
LH: loop header
LB: loop body
LE: loop exit
PB: predicated region body
PF: predicated region fallthrough
CT: control target
= control target key end

     0   :  { %11 = vsyncpa [#allocation3], 0  ;;  %s686_s0 = inlined_call_operand.vmem [shape: s32[16,1], index: 0, kind: input, shape index: {}]   ;;  %s687_s1 = inlined_call_operand.vmem [shape: bf16[128,32], index: 1, kind: input, shape index: {}]   ;;  %s688_s2 = inlined_call_operand.hbm [shape: bf16[96,128], index: 2, kind: input, shape index: {}]   ;;  %s689_s3 = inlined_call_operand.vmem [shape: f32[1,128], index: 3, kind: input, shape index: {}]   ;;  %s690_s4 = inlined_call_operand.vmem [shape: bf16[128,128], index: 4, kind: input, shape index: {}]   ;;  %s691_s5 = inlined_call_operand.vmem [shape: f32[1,128], index: 5, kind: input, shape index: {}]   ;;  %s692_s6 = inlined_call_operand.hbm [shape: f32[2,128], index: 6, kind: output, shape index: {}]  }
   0x1   :  { %12 = vsyncpa [#allocation4], 0  ;;  %s21_s23 = sshll.u32 %s688_s2, 4  ;;  %s575_s24 = smov [#allocation2]   ;;  %s22_s23 = int_to_ptr.hbm [resolvable:$true] %s21_s23 }
   0x2   :  { %s23_s25 = sshll.u32 %s575_s24, 4  ;;  %s576_s26 = smov 64   ;;  %s24_s25 = int_to_ptr.vmem [resolvable:$true] %s23_s25 }
   0x3   :  { %s577_s27 = smov 4  }
   0x4   :  { %29 = dma.hbm_to_vmem [thread:$0]  %s22_s23, 768, %s24_s25, [#allocation3], %s576_s26, %s576_s26, %s577_s27  }
   0x5   :  { %571 = dma.done.wait [#allocation3], 768  }
   0x6   :  { %572 = vsyncadd [#allocation3], 4294966528  ;;  %v578_v0 = vmov 0   ;;  %v41_v1 = vld [vmem:[%s686_s0] sm:$0xff]  ;;  %v498_v2 = vld [vmem:[%s687_s1 + $0x38] sm:$0xff]  ;;  %v43_v12 = vlaneseq  ;;  %vm159_vm4 = vcmask 1046528  }
   0x7   :  { %520 = vset.pattern.permute.xlu0 %v578_v0  ;;  %122 = vmatpush.bf16.msra.mxu0 %v498_v2  ;;  %v497_v3 = vld [vmem:[%s687_s1 + $0x30] sm:$0xff]  ;;  %v42_v4 = vld [vmem:[%s686_s0 + $0x8] sm:$0xff]  ;;  %v495_v6 = vld [vmem:[%s687_s1 + $0x20] sm:$0xff]  ;;  %v579_v15 = vmov 1.0|1.0   ;;  %v154_v30 = vrot.slane %v578_v0, 1 }
   0x8   :  { %46 = vperm.xlu0 %520, %v41_v1   ;;  %v496_v5 = vld [vmem:[%s687_s1 + $0x28] sm:$0xff]  ;;  %v494_v7 = vld [vmem:[%s687_s1 + $0x18] sm:$0xff]  ;;  %v493_v8 = vld [vmem:[%s687_s1 + $0x10] sm:$0xff]  ;;  %v44_v13 = vand.u32 127, %v43_v12  ;;  %vm143_vm3 = vsmask.f32 7424 }
   0x9   :  { %v492_v9 = vld [vmem:[%s687_s1 + $0x8] sm:$0xff]  ;;  %v491_v10 = vld [vmem:[%s687_s1] sm:$0xff]  ;;  %v502_v19 = vld [vmem:[#allocation2 + $0x18] sm:$0xff]  ;;  %s580_s1 = smov 32   ;;  %vm165_vm5 = vcmask 261120   ;;  %vm168_vm6 = vcmask 523264  }
   0xa   :  { %v504_v16 = vld [vmem:[#allocation2 + $0x28] sm:$0xff]  ;;  %v503_v18 = vld [vmem:[#allocation2 + $0x20] sm:$0xff]  ;;  %v501_v22 = vld [vmem:[#allocation2 + $0x10] sm:$0xff]  ;;  %vm223_vm7 = vcmask 785408   ;;  %v243_v48 = vshrl.u32 %v43_v12, 7  ;;  %vm315_vm10 = vcmask 1041409  }
   0xb   :  { %123 = vmatpush.bf16.msra.mxu0 %v497_v3  ;;  %228 = vmatpush.bf16.msra.mxu1 %v504_v16  ;;  %v500_v35 = vld [vmem:[#allocation2 + $0x8] sm:$0xff]  ;;  %v499_v36 = vld [vmem:[#allocation2] sm:$0xff]  ;;  %v512_v41 = vld [vmem:[%s690_s4 + $0x38] sm:$0xff]  ;;  %s581_s15 = smov [#allocation5]   ;;  %s388_s0 = sshll.u32 %s692_s6, 4  ;;  %s389_s0 = int_to_ptr.hbm [resolvable:$true] %s388_s0 }
   0xc   :  { %367 = vmatpush.bf16.msra.mxu2 %v512_v41  ;;  %v511_v42 = vld [vmem:[%s690_s4 + $0x30] sm:$0xff]  ;;  %v510_v43 = vld [vmem:[%s690_s4 + $0x28] sm:$0xff]  ;;  %v509_v44 = vld [vmem:[%s690_s4 + $0x20] sm:$0xff]  ;;  %v249_v51 = vand.u32 7, %v243_v48  ;;  %v244_v54 = vadd.s32 8, %v243_v48  ;;  %s386_s16 = sshll.u32 %s581_s15, 4  ;;  %s387_s16 = int_to_ptr.vmem [resolvable:$true] %s386_s16 }
   0xd   :  { %v508_v45 = vld [vmem:[%s690_s4 + $0x18] sm:$0xff]  ;;  %v507_v46 = vld [vmem:[%s690_s4 + $0x10] sm:$0xff]  ;;  %v506_v47 = vld [vmem:[%s690_s4 + $0x8] sm:$0xff] }
   0xe   :  { %v505_v49 = vld [vmem:[%s690_s4] sm:$0xff]  ;;  %vm269_vm8 = vcmp.lt.s32.totalorder %v249_v51, 6  ;;  %v256_v58 = vand.u32 7, %v244_v54 }
   0xf   :  { %124 = vmatpush.bf16.msra.mxu0 %v496_v5  ;;  %229 = vmatpush.bf16.msra.mxu1 %v503_v18  ;;  %v521_v50 = vld [vmem:[%s689_s3] ss:$0 sm:$0xff] }
  0x10   :  { %49 = vperm.xlu0 %520, %v42_v4   ;;  %368 = vmatpush.bf16.msra.mxu2 %v511_v42  ;;  %vm270_vm9 = vcmp.lt.s32.totalorder %v256_v58, 6  ;;  %v522_v16 = vld [vmem:[%s691_s5] ss:$0 sm:$0xff] }
  0x13   :  { %125 = vmatpush.bf16.msra.mxu0 %v495_v6  ;;  %230 = vmatpush.bf16.msra.mxu1 %v502_v19 }
  0x14   :  { %369 = vmatpush.bf16.msra.mxu2 %v510_v43 }
  0x17   :  { %126 = vmatpush.bf16.msra.mxu0 %v494_v7  ;;  %231 = vmatpush.bf16.msra.mxu1 %v501_v22 }
  0x18   :  { %370 = vmatpush.bf16.msra.mxu2 %v509_v44 }
  0x1b   :  { %127 = vmatpush.bf16.msra.mxu0 %v493_v8  ;;  %232 = vmatpush.bf16.msra.mxu1 %v500_v35 }
  0x1c   :  { %371 = vmatpush.bf16.msra.mxu2 %v508_v45 }
  0x1f   :  { %128 = vmatpush.bf16.msra.mxu0 %v492_v9  ;;  %233 = vmatpush.bf16.msra.mxu1 %v499_v36 }
  0x20   :  { %372 = vmatpush.bf16.msra.mxu2 %v507_v46 }
  0x23   :  { %129 = vmatpush.bf16.msra.mxu0 %v491_v10 }
  0x24   :  { %373 = vmatpush.bf16.msra.mxu2 %v506_v47 }
  0x28   :  { %374 = vmatpush.bf16.msra.mxu2 %v505_v49 }
  0x7a   :  { %v47_v11 = vpop.permute.xlu0 %46 }
  0x7b   :  { %vm51_vm0 = vcmp.eq.s32.totalorder %v44_v13, %v47_v11 }
  0x82   :  { %v50_v14 = vpop.permute.xlu0 %49 }
  0x83   :  { %vm52_vm1 = vcmp.eq.s32.totalorder %v44_v13, %v50_v14 }
  0x84   :  { %vm432_vm2 = vmpackc.low %vm52_vm1, %vm51_vm0 }
  0x85   :  { %433 = vmatmul.msk.bf16.vlgmr.msra.gmra.mxu0 %vm432_vm2, %v579_v15 }
 0x102   :  { %v131_v17 = vpop.f32.mrf.mxu0 }
 0x103   :  { %v136_v20 = vpack.c.bf16 %v131_v17, %v131_v17 }
 0x105   :  { %v140_v24 = vunpack.c.l.b16 %v136_v20 }
 0x10a   :  { %v133_v21 = vpop.f32.mrf.mxu0 }
 0x10b   :  { %v137_v23 = vpack.c.bf16 %v133_v21, %v133_v21 }
 0x10d   :  { %v141_v25 = vunpack.c.l.b16 %v137_v23 }
 0x10f   :  { %v142_v26 = vpack.c.b16 %v141_v25, %v140_v24 }
 0x111   :  { %v147_v27 = vshll.u32 %v142_v26, 16  ;;  %v145_v28 = vshrl.u32 %v142_v26, 16  ;;  %v160_v33 = vrot.slane %v142_v26, 1 }
 0x113   :  { %v149_v29 = vrot.slane %v147_v27, 1  ;;  %v162_v34 = vsel %vm159_vm4, %v160_v33, %v154_v30 }
 0x115   :  { %v150_v31 = vor.u32 %v149_v29, %v145_v28 }
 0x117   :  { %v155_v32 = vsel %vm143_vm3, %v150_v31, %v154_v30 }
 0x118   :  { %156 = vrot.lane.b32.xlu1 %v155_v32, %s580_s1 }
 0x120   :  { %163 = vrot.lane.b32.xlu1 %v162_v34, %s576_s26 }
 0x18a   :  { %v157_v37 = vpop.permute.xlu1 %156 }
 0x18b   :  { %v167_v38 = vsel %vm165_vm5, %v142_v26, %v157_v37 }
 0x192   :  { %v164_v39 = vpop.permute.xlu1 %163 }
 0x193   :  { %v170_v40 = vsel %vm168_vm6, %v167_v38, %v164_v39 }
 0x194   :  { %458 = vmatmul.msk.bf16.vlgmr.msra.gmra.mxu1 %vm223_vm7, %v170_v40 }
 0x211   :  { %v235_v52 = vpop.f32.mrf.mxu1 }
 0x212   :  { %v236_v53 = vadd.f32 %v521_v50, %v235_v52 }
 0x214   :  { %v240_v55 = vmax.f32 %v236_v53, 0.0 }
 0x216   :  { %v275_v56 = vsel %vm269_vm8, %v240_v55, 0.0 }
 0x217   :  { %v277_v57 = vrot.slane %v275_v56, 4 }
 0x219   :  { %v278_v59 = vmax.f32 %v275_v56, %v277_v57  ;;  %v237_v60 = vpop.f32.mrf.mxu1 }
 0x21a   :  { %v238_v61 = vadd.f32 %v521_v50, %v237_v60 }
 0x21b   :  { %v279_v62 = vrot.slane %v278_v59, 2 }
 0x21c   :  { %v241_v63 = vmax.f32 %v238_v61, 0.0 }
 0x21d   :  { %v280_v0 = vmax.f32 %v278_v59, %v279_v62 }
 0x21e   :  { %v276_v1 = vsel %vm270_vm9, %v241_v63, 0.0 }
 0x21f   :  { %v283_v2 = vrot.slane %v276_v1, 4  ;;  %v281_v3 = vrot.slane %v280_v0, 1 }
 0x221   :  { %v284_v4 = vmax.f32 %v276_v1, %v283_v2  ;;  %v282_v7 = vmax.f32 %v280_v0, %v281_v3 }
 0x223   :  { %v285_v5 = vrot.slane %v284_v4, 2  ;;  %v289_v10 = vpack.c.bf16 %v282_v7, %v282_v7 }
 0x225   :  { %v286_v6 = vmax.f32 %v284_v4, %v285_v5  ;;  %v313_v12 = vunpack.c.l.b16 %v289_v10 }
 0x227   :  { %v287_v8 = vrot.slane %v286_v6, 1 }
 0x229   :  { %v288_v9 = vmax.f32 %v286_v6, %v287_v8 }
 0x22b   :  { %v290_v11 = vpack.c.bf16 %v288_v9, %v288_v9 }
 0x22d   :  { %v314_v13 = vunpack.c.l.b16 %v290_v11 }
 0x22f   :  { %v316_v14 = vsel %vm315_vm10, %v314_v13, %v313_v12 }
 0x230   :  { %v317_v15 = vpack.c.b16 %v316_v14, %v316_v14 }
 0x232   :  { %375 = vmatmul.bf16.vlgmr.msra.gmra.mxu2 %v317_v15 }
 0x2b5   :  { %v376_v17 = vpop.f32.mrf.mxu2 }
 0x2b6   :  { %v377_v18 = vadd.f32 %v522_v16, %v376_v17 }
 0x2b8   :  { %380 = vst [vmem:[#allocation5] sm:$0x3] %v377_v18 }
 0x2b9   :  { %391 = dma.vmem_to_hbm [thread:$0]  %s387_s16, 32, %s389_s0, [#allocation4]  }
 0x2bd   :  { %v378_v19 = vpop.f32.mrf.mxu2 }
 0x2be   :  { %573 = dma.done.wait [#allocation4], 32  }
 0x2bf   :  { %574 = vsyncadd [#allocation4], 4294967264 }
 0x2c0   :  { %396 = vsyncpa [#allocation3], 1 }
 0x2c1   :  { %397 = vsyncpa [#allocation4], 1 }

</bundles_post_ra>
